<compile_context>
chip_gen: v6e
topology: v6e:2x2x1
jax: 0.10.0
libtpu: 0.0.40
codegen_flags: <defaults>
</compile_context>

<pallas_src>
import math

import numpy as np
import jax
import jax.numpy as jnp
from jax.experimental import pallas as pl
from jax.experimental.pallas import tpu as pltpu

_HIDDEN_PAD = 128  # pad the MLP hidden dim to a full lane width (free on the MXU)


# ------------------------------------------------------------------------------------------------
# DDPM "squaredcos_cap_v2" beta schedule (diffusers.DDPMScheduler)
# ------------------------------------------------------------------------------------------------
def squaredcos_cap_v2_betas(num_train_timesteps: int, max_beta: float = 0.999) -> np.ndarray:
    def alpha_bar(t):
        return math.cos((t + 0.008) / 1.008 * math.pi / 2) ** 2

    betas = []
    for i in range(num_train_timesteps):
        t1 = i / num_train_timesteps
        t2 = (i + 1) / num_train_timesteps
        betas.append(min(1.0 - alpha_bar(t2) / alpha_bar(t1), max_beta))
    return np.asarray(betas, dtype=np.float64)


def _build_ddpm_coef_table(alphas_cumprod: np.ndarray, n_timesteps: int) -> np.ndarray:
    """DDPMScheduler.step coefficients (epsilon prediction, clip_sample=True, fixed_small
    variance).  Row i corresponds to grid step i, i.e. timestep t = n_timesteps - 1 - i."""
    table = np.zeros((n_timesteps, 8), dtype=np.float32)
    for i, t in enumerate(range(n_timesteps - 1, -1, -1)):
        alpha_prod_t = alphas_cumprod[t]
        alpha_prod_t_prev = alphas_cumprod[t - 1] if t > 0 else 1.0
        beta_prod_t = 1.0 - alpha_prod_t
        beta_prod_t_prev = 1.0 - alpha_prod_t_prev
        current_alpha_t = alpha_prod_t / alpha_prod_t_prev
        current_beta_t = 1.0 - current_alpha_t
        variance = max(beta_prod_t_prev / beta_prod_t * current_beta_t, 1e-20)
        table[i, 0] = beta_prod_t ** 0.5                                     # sqrt(1 - a_bar_t)
        table[i, 1] = alpha_prod_t ** -0.5                                   # 1 / sqrt(a_bar_t)
        table[i, 2] = (alpha_prod_t_prev ** 0.5) * current_beta_t / beta_prod_t
        table[i, 3] = (current_alpha_t ** 0.5) * beta_prod_t_prev / beta_prod_t
        table[i, 4] = (variance ** 0.5) if t > 0 else 0.0                    # noise gate (0 at t=0)
    return table


# ------------------------------------------------------------------------------------------------
# Fused reverse-diffusion kernel: the whole timestep loop is the Pallas grid.
#   grid = (n_timesteps,)  ["arbitrary"]; operands VMEM/SMEM-resident except the per-step noise,
#   which is streamed one (M, D) block per step (double-buffered prefetch); x lives in scratch.
# ------------------------------------------------------------------------------------------------
def _fused_denoise_kernel(coefs_ref,    # SMEM (TS, 8)   per-step DDPM scalars
                          x_init_ref,   # VMEM (M, D)    0.5 * randn initial trajectory
                          cond_ref,     # VMEM (Hr, D)   history-window rows (t < history_horizon)
                          w1_ref,       # VMEM (D, HP)   eps-MLP layer 1 (hidden zero-padded)
                          bias_ref,     # VMEM (TS, HP)  per-step b1 + time-embedding(t)
                          w2_ref,       # VMEM (HP, D)   eps-MLP layer 2
                          b2_ref,       # VMEM (1, D)
                          noise_ref,    # VMEM (M, D)    THIS step's scheduler noise (blocked)
                          out_ref,      # VMEM (M, D)
                          x_scr):       # scratch VMEM (M, D) -- trajectory carried across steps
    step = pl.program_id(0)
    n_hist_rows = cond_ref.shape[0]

    @pl.when(step == 0)
    def _init():
        x_scr[...] = x_init_ref[...]

    # apply_conditioning (data_encoder == IdentityEncoder): history rows are the leading rows
    x_scr[:n_hist_rows, :] = cond_ref[...]
    x = x_scr[...]

    # shared per-agent epsilon model (synthetic 2-layer MLP); bias row folds b1 + temb(t)
    bias = bias_ref[pl.ds(step, 1), :]                                   # (1, HP)
    h = jnp.maximum(
        jnp.dot(x, w1_ref[...], preferred_element_type=jnp.float32) + bias, 0.0)
    eps = jnp.dot(h, w2_ref[...], preferred_element_type=jnp.float32) + b2_ref[...]

    # DDPMScheduler.step (prediction_type='epsilon', clip_sample=True, fixed_small variance)
    sqrt_beta_prod = coefs_ref[step, 0]
    inv_sqrt_alpha_prod = coefs_ref[step, 1]
    orig_coef = coefs_ref[step, 2]
    cur_coef = coefs_ref[step, 3]
    noise_coef = coefs_ref[step, 4]          # 0.0 on the final step (t == 0)

    pred_orig = (x - sqrt_beta_prod * eps) * inv_sqrt_alpha_prod
    pred_orig = jnp.clip(pred_orig, -1.0, 1.0)   # scheduler config clip_sample=True
    x_new = orig_coef * pred_orig + cur_coef * x + noise_coef * noise_ref[...]
    x_scr[...] = x_new

    @pl.when(step == pl.num_programs(0) - 1)
    def _finalize():
        out_ref[...] = x_new
        out_ref[:n_hist_rows, :] = cond_ref[...]   # final apply_conditioning after the loop


# ------------------------------------------------------------------------------------------------
# QMixNet.forward: w = |states @ Wh + bh|; b = states @ Wb + bb
#   mixed = bmm(actions, w.view(B, A, AD)) + b  ==  (actions_rep * w) @ block_diag_selector + b
# (no per-agent lane-unaligned slicing: the agent reduction is a single tiny MXU contraction)
# ------------------------------------------------------------------------------------------------
def _qmix_kernel(acts_rep_ref, states_ref, wh_ref, bh_ref, wb_ref, bb_ref, sel_ref, o_ref):
    states = states_ref[...]
    w = jnp.abs(jnp.dot(states, wh_ref[...], preferred_element_type=jnp.float32) + bh_ref[...])
    b = jnp.dot(states, wb_ref[...], preferred_element_type=jnp.float32) + bb_ref[...]
    mixed = jnp.dot(acts_rep_ref[...] * w, sel_ref[...],
                    preferred_element_type=jnp.float32) + b
    o_ref[...] = mixed.astype(o_ref.dtype)


# ------------------------------------------------------------------------------------------------
# GaussianDiffusion (forward == conditional_sample) in JAX + Pallas
# ------------------------------------------------------------------------------------------------
class GaussianDiffusionPallas:
    def __init__(self, n_agents, horizon, history_horizon, observation_dim, action_dim,
                 hidden_dim=32, n_timesteps=8, condition_guidance_w=1.2,
                 returns_condition=False, use_qmix_combiner=True, seed=0):
        assert action_dim > 0
        self.n_agents = n_agents
        self.horizon = horizon
        self.history_horizon = history_horizon
        self.observation_dim = observation_dim
        self.action_dim = action_dim
        self.transition_dim = observation_dim + action_dim
        self.n_timesteps = int(n_timesteps)
        self.condition_guidance_w = condition_guidance_w
        self.returns_condition = returns_condition
        self.clip_denoised = False    # sampling clips via DDPMScheduler(clip_sample=True), as spec
        self.predict_epsilon = True
        self.hidden_dim = hidden_dim

        # noise scheduler tables (squaredcos_cap_v2) + per-step scalar coefficient table (SMEM)
        betas = squaredcos_cap_v2_betas(self.n_timesteps)
        self.alphas_cumprod = np.cumprod(1.0 - betas)
        self.coef_table = jnp.asarray(
            _build_ddpm_coef_table(self.alphas_cumprod, self.n_timesteps))

        # synthetic shared per-agent epsilon model (deterministic init); hidden dim zero-padded to
        # 128 lanes (mathematically identical to hidden_dim); per-step bias folds b1 + temb(t)
        key = jax.random.PRNGKey(seed)
        k1, k2, k3, k4 = jax.random.split(key, 4)
        D, H, HP = observation_dim, hidden_dim, _HIDDEN_PAD
        assert H <= HP
        w1 = np.asarray(jax.random.normal(k1, (D, H), jnp.float32)) / np.sqrt(D)
        w2 = np.asarray(jax.random.normal(k2, (H, D), jnp.float32)) / np.sqrt(H)
        b1 = np.zeros((H,), np.float32)
        w1_pad = np.zeros((D, HP), np.float32)
        w1_pad[:, :H] = w1
        w2_pad = np.zeros((HP, D), np.float32)
        w2_pad[:H, :] = w2
        freqs = np.exp(-np.arange(H, dtype=np.float64) * (math.log(10000.0) / max(H - 1, 1)))
        bias = np.zeros((self.n_timesteps, HP), np.float32)
        for i, t in enumerate(range(self.n_timesteps - 1, -1, -1)):
            bias[i, :H] = b1 + np.sin(t * freqs)
        self.w1_pad = jnp.asarray(w1_pad)
        self.w2_pad = jnp.asarray(w2_pad)
        self.bias_table = jnp.asarray(bias)
        self.b2 = jnp.zeros((1, D), jnp.float32)

        # QMixNet(state_dim=observation_dim, n_agents, action_dim)
        self.use_qmix_combiner = use_qmix_combiner
        S = observation_dim
        self.qmix_wh = (jax.random.normal(k3, (S, n_agents * action_dim), jnp.float32)
                        / np.sqrt(S)).astype(jnp.float32)
        self.qmix_bh = jnp.zeros((1, n_agents * action_dim), jnp.float32)
        self.qmix_wb = (jax.random.normal(k4, (S, action_dim), jnp.float32)
                        / np.sqrt(S)).astype(jnp.float32)
        self.qmix_bb = jnp.zeros((1, action_dim), jnp.float32)
        # static block-diagonal selector: (acts_rep * w) @ sel == torch.bmm over agents
        self.qmix_sel = jnp.asarray(np.tile(np.eye(action_dim, dtype=np.float32), (n_agents, 1)))

        # TODO(synk): inv_model / loss weights / returns-guidance (classifier-free guidance with
        #             condition_guidance_w) are training/returns-conditional paths not exercised
        #             by forward() with returns_condition=False; omitted here.

        self._sample_jit = jax.jit(self._sample_impl, static_argnames=("horizon",))

    # ------------------------------- fused sampler (jitted) -------------------------------
    def _sample_impl(self, cond_x, key, horizon):
        B, HIST, A, D = cond_x.shape
        T = horizon
        TS = self.n_timesteps
        HP = _HIDDEN_PAD
        M = T * B * A                       # flat rows in (t, b, a) order
        n_hist_rows = HIST * B * A

        k0, kn = jax.random.split(key)
        x_init = 0.5 * jax.random.normal(k0, (M, D), jnp.float32)
        noise = jax.random.normal(kn, (TS, M, D), jnp.float32)   # all step noises in one draw
        cond_flat = jnp.transpose(cond_x, (1, 0, 2, 3)).reshape(n_hist_rows, D)

        grid_spec = pltpu.PrefetchScalarGridSpec(
            num_scalar_prefetch=0,
            grid=(TS,),
            in_specs=[
                pl.BlockSpec(memory_space=pltpu.MemorySpace.SMEM),   # DDPM scalar table
                pl.BlockSpec((M, D), lambda i: (0, 0)),              # x_init      (resident)
                pl.BlockSpec((n_hist_rows, D), lambda i: (0, 0)),    # conditioning (resident)
                pl.BlockSpec((D, HP), lambda i: (0, 0)),             # w1          (resident)
                pl.BlockSpec((TS, HP), lambda i: (0, 0)),            # bias+temb   (resident)
                pl.BlockSpec((HP, D), lambda i: (0, 0)),             # w2          (resident)
                pl.BlockSpec((1, D), lambda i: (0, 0)),              # b2          (resident)
                pl.BlockSpec((None, M, D), lambda i: (i, 0, 0)),     # noise: streamed per step,
                                                                     # prefetched by the pipeline
            ],
            out_specs=pl.BlockSpec((M, D), lambda i: (0, 0)),        # written on last step only
            scratch_shapes=[pltpu.VMEM((M, D), jnp.float32)],        # trajectory accumulator
        )
        out2d = pl.pallas_call(
            _fused_denoise_kernel,
            out_shape=jax.ShapeDtypeStruct((M, D), jnp.float32),
            grid_spec=grid_spec,
            compiler_params=pltpu.CompilerParams(dimension_semantics=("arbitrary",)),
        )(self.coef_table, x_init, cond_flat, self.w1_pad, self.bias_table,
          self.w2_pad, self.b2, noise)

        # rows are (t, b, a) -> back to (B, T, A, D)
        return out2d.reshape(T, B, A, D).transpose(1, 0, 2, 3)

    # -------------------------------- conditional_sample (== forward) --------------------------------
    def conditional_sample(self, cond, key, returns=None, env_ts=None, horizon=None,
                           attention_masks=None, verbose=False, return_diffusion=False):
        # data_encoder == IdentityEncoder(); returns / env_ts / attention_masks are unused by the
        # synthetic epsilon model.
        # TODO(synk): return_diffusion snapshots are not materialized by the fused kernel.
        assert not return_diffusion, "return_diffusion not supported by the fused Pallas sampler"
        horizon = horizon or (self.horizon + self.history_horizon)
        cond_x = jnp.asarray(cond["x"], jnp.float32)
        return self._sample_jit(cond_x, key, horizon=horizon)

    def forward(self, cond, *args, **kwargs):
        return self.conditional_sample(*args, cond=cond, **kwargs)

    __call__ = forward

    # -------------------------------- QMixNet.forward --------------------------------
    def qmix_forward(self, actions, states):
        B = actions.shape[0]
        AD = self.action_dim
        acts_rep = jnp.repeat(actions.astype(jnp.float32), AD, axis=1)   # (B, A*AD)
        return pl.pallas_call(
            _qmix_kernel,
            out_shape=jax.ShapeDtypeStruct((B, AD), jnp.float32),
            in_specs=[pl.BlockSpec(memory_space=pltpu.MemorySpace.VMEM)] * 7,
            out_specs=pl.BlockSpec(memory_space=pltpu.MemorySpace.VMEM),
        )(acts_rep, states.astype(jnp.float32), self.qmix_wh, self.qmix_bh,
          self.qmix_wb, self.qmix_bb, self.qmix_sel)


# ------------------------------------------------------------------------------------------------
if __name__ == "__main__":
    B, A, HOR, HIST, OBS, ACT = 2, 2, 8, 2, 16, 4

    diffusion = GaussianDiffusionPallas(
        n_agents=A, horizon=HOR, history_horizon=HIST,
        observation_dim=OBS, action_dim=ACT,
        hidden_dim=32, n_timesteps=8, seed=0,
    )

    key = jax.random.PRNGKey(0)
    k_cond, k_samp, k_qa, k_qs = jax.random.split(key, 4)

    cond = {"x": jax.random.normal(k_cond, (B, HIST, A, OBS), jnp.float32)}

    out = jax.block_until_ready(diffusion(cond, key=k_samp))
    assert out.shape == (B, HOR + HIST, A, OBS)
    assert bool(jnp.all(jnp.isfinite(out)))
    # history window must equal the conditioning (final apply_conditioning inside the kernel)
    assert bool(jnp.allclose(out[:, :HIST], cond["x"]))

    # exercise the QMixNet combiner kernel (used by the use_qmix_combiner path)
    actions = jax.random.normal(k_qa, (B, A), jnp.float32)
    states = jax.random.normal(k_qs, (B, OBS), jnp.float32)
    mixed = jax.block_until_ready(diffusion.qmix_forward(actions, states))
    assert mixed.shape == (B, ACT)
    assert bool(jnp.all(jnp.isfinite(mixed)))

    print("KERNEL_OK")
</pallas_src>

<mosaic_0001>
module attributes {stable_mosaic.version = 11 : i64} {
  func.func @_fused_denoise_kernel(%arg0: i32, %arg1: memref<8x8xf32, #tpu.memory_space<smem>>, %arg2: memref<40x16xf32, #tpu.memory_space<vmem>>, %arg3: memref<8x16xf32, #tpu.memory_space<vmem>>, %arg4: memref<16x128xf32, #tpu.memory_space<vmem>>, %arg5: memref<8x128xf32, #tpu.memory_space<vmem>>, %arg6: memref<128x16xf32, #tpu.memory_space<vmem>>, %arg7: memref<1x16xf32, #tpu.memory_space<vmem>>, %arg8: memref<1x40x16xf32, #tpu.memory_space<vmem>>, %arg9: memref<40x16xf32, #tpu.memory_space<vmem>>, %arg10: memref<40x16xf32, #tpu.memory_space<vmem>>) attributes {dimension_semantics = [#tpu.dimension_semantics<arbitrary>], iteration_bounds = array<i64: 8>, scalar_prefetch = 0 : i64, scratch_operands = 1 : i64, tpu.core_type = #tpu.core_type<tc>, window_params = [{transform_indices = @transform_0, window_bounds = array<i64: 8, 8>}, {pipeline_mode = #tpu.pipeline_mode<synchronous>, transform_indices = @transform_1, window_bounds = array<i64: 40, 16>}, {pipeline_mode = #tpu.pipeline_mode<synchronous>, transform_indices = @transform_2, window_bounds = array<i64: 8, 16>}, {pipeline_mode = #tpu.pipeline_mode<synchronous>, transform_indices = @transform_3, window_bounds = array<i64: 16, 128>}, {pipeline_mode = #tpu.pipeline_mode<synchronous>, transform_indices = @transform_4, window_bounds = array<i64: 8, 128>}, {pipeline_mode = #tpu.pipeline_mode<synchronous>, transform_indices = @transform_5, window_bounds = array<i64: 128, 16>}, {pipeline_mode = #tpu.pipeline_mode<synchronous>, transform_indices = @transform_6, window_bounds = array<i64: 1, 16>}, {transform_indices = @transform_7, window_bounds = array<i64: 1, 40, 16>}, {pipeline_mode = #tpu.pipeline_mode<synchronous>, transform_indices = @transform_8, window_bounds = array<i64: 40, 16>}]} {
    %c0_i32 = arith.constant 0 : i32
    %0 = arith.cmpi eq, %arg0, %c0_i32 : i32
    %1 = arith.extui %0 : i1 to i32
    %c0_i32_0 = arith.constant 0 : i32
    %2 = arith.cmpi ne, %1, %c0_i32_0 : i32
    scf.if %2 {
      %c0_24 = arith.constant 0 : index
      %c0_25 = arith.constant 0 : index
      %52 = vector.load %arg2[%c0_24, %c0_25] : memref<40x16xf32, #tpu.memory_space<vmem>>, vector<40x16xf32>
      %c0_26 = arith.constant 0 : index
      %c0_27 = arith.constant 0 : index
      %53 = vector.load %arg10[%c0_26, %c0_27] : memref<40x16xf32, #tpu.memory_space<vmem>>, vector<40x16xf32>
      tpu.vector_store %arg10[%c0_26, %c0_27], %52 {strides = array<i32>} : memref<40x16xf32, #tpu.memory_space<vmem>>, vector<40x16xf32>,
    } else {
    }
    %c0 = arith.constant 0 : index
    %c0_1 = arith.constant 0 : index
    %3 = vector.load %arg3[%c0, %c0_1] : memref<8x16xf32, #tpu.memory_space<vmem>>, vector<8x16xf32>
    %c0_2 = arith.constant 0 : index
    %c0_3 = arith.constant 0 : index
    %4 = vector.load %arg10[%c0_2, %c0_3] : memref<40x16xf32, #tpu.memory_space<vmem>>, vector<8x16xf32>
    tpu.vector_store %arg10[%c0_2, %c0_3], %3 {strides = array<i32>} : memref<40x16xf32, #tpu.memory_space<vmem>>, vector<8x16xf32>,
    %c0_4 = arith.constant 0 : index
    %c0_5 = arith.constant 0 : index
    %5 = vector.load %arg10[%c0_4, %c0_5] : memref<40x16xf32, #tpu.memory_space<vmem>>, vector<40x16xf32>
    %6 = arith.index_cast %arg0 : i32 to index
    %c0_6 = arith.constant 0 : index
    %7 = vector.load %arg5[%6, %c0_6] : memref<8x128xf32, #tpu.memory_space<vmem>>, vector<1x128xf32>
    %c0_7 = arith.constant 0 : index
    %c0_8 = arith.constant 0 : index
    %8 = vector.load %arg4[%c0_7, %c0_8] : memref<16x128xf32, #tpu.memory_space<vmem>>, vector<16x128xf32>
    %cst = arith.constant dense<0.000000e+00> : vector<40x128xf32>
    %9 = tpu.matmul %5, %8, %cst {dimension_numbers = #tpu.dot_dimension_numbers<[1], [0], [0], [1], [0, 0, 1, 1], [], []>} : vector<40x16xf32>, vector<16x128xf32>, vector<40x128xf32> -> vector<40x128xf32>
    %10 = vector.broadcast %7 : vector<1x128xf32> to vector<40x128xf32>
    %11 = arith.addf %9, %10 : vector<40x128xf32>
    %cst_9 = arith.constant 0.000000e+00 : f32
    %12 = vector.broadcast %cst_9 : f32 to vector<40x128xf32>
    %13 = arith.maximumf %11, %12 : vector<40x128xf32>
    %c0_10 = arith.constant 0 : index
    %c0_11 = arith.constant 0 : index
    %14 = vector.load %arg6[%c0_10, %c0_11] : memref<128x16xf32, #tpu.memory_space<vmem>>, vector<128x16xf32>
    %cst_12 = arith.constant dense<0.000000e+00> : vector<40x16xf32>
    %15 = tpu.matmul %13, %14, %cst_12 {dimension_numbers = #tpu.dot_dimension_numbers<[1], [0], [0], [1], [0, 0, 1, 1], [], []>} : vector<40x128xf32>, vector<128x16xf32>, vector<40x16xf32> -> vector<40x16xf32>
    %c0_13 = arith.constant 0 : index
    %c0_14 = arith.constant 0 : index
    %16 = vector.load %arg7[%c0_13, %c0_14] : memref<1x16xf32, #tpu.memory_space<vmem>>, vector<1x16xf32>
    %17 = vector.broadcast %16 : vector<1x16xf32> to vector<40x16xf32>
    %18 = arith.addf %15, %17 : vector<40x16xf32>
    %19 = arith.index_cast %arg0 : i32 to index
    %c0_15 = arith.constant 0 : index
    %20 = memref.load %arg1[%19, %c0_15] : memref<8x8xf32, #tpu.memory_space<smem>>
    %21 = arith.index_cast %arg0 : i32 to index
    %c1 = arith.constant 1 : index
    %22 = memref.load %arg1[%21, %c1] : memref<8x8xf32, #tpu.memory_space<smem>>
    %23 = arith.index_cast %arg0 : i32 to index
    %c2 = arith.constant 2 : index
    %24 = memref.load %arg1[%23, %c2] : memref<8x8xf32, #tpu.memory_space<smem>>
    %25 = arith.index_cast %arg0 : i32 to index
    %c3 = arith.constant 3 : index
    %26 = memref.load %arg1[%25, %c3] : memref<8x8xf32, #tpu.memory_space<smem>>
    %27 = arith.index_cast %arg0 : i32 to index
    %c4 = arith.constant 4 : index
    %28 = memref.load %arg1[%27, %c4] : memref<8x8xf32, #tpu.memory_space<smem>>
    %29 = vector.broadcast %20 : f32 to vector<40x16xf32>
    %30 = arith.mulf %29, %18 : vector<40x16xf32>
    %31 = arith.subf %5, %30 : vector<40x16xf32>
    %32 = vector.broadcast %22 : f32 to vector<40x16xf32>
    %33 = arith.mulf %31, %32 : vector<40x16xf32>
    %cst_16 = arith.constant -1.000000e+00 : f32
    %cst_17 = arith.constant 1.000000e+00 : f32
    %34 = vector.broadcast %cst_16 : f32 to vector<40x16xf32>
    %35 = arith.maximumf %34, %33 : vector<40x16xf32>
    %36 = vector.broadcast %cst_17 : f32 to vector<40x16xf32>
    %37 = arith.minimumf %36, %35 : vector<40x16xf32>
    %38 = vector.broadcast %24 : f32 to vector<40x16xf32>
    %39 = arith.mulf %38, %37 : vector<40x16xf32>
    %40 = vector.broadcast %26 : f32 to vector<40x16xf32>
    %41 = arith.mulf %40, %5 : vector<40x16xf32>
    %42 = arith.addf %39, %41 : vector<40x16xf32>
    %c0_18 = arith.constant 0 : index
    %c0_19 = arith.constant 0 : index
    %c0_20 = arith.constant 0 : index
    %43 = vector.load %arg8[%c0_18, %c0_19, %c0_20] : memref<1x40x16xf32, #tpu.memory_space<vmem>>, vector<1x40x16xf32>
    %44 = vector.shape_cast %43 : vector<1x40x16xf32> to vector<40x16xf32>
    %45 = vector.broadcast %28 : f32 to vector<40x16xf32>
    %46 = arith.mulf %45, %44 : vector<40x16xf32>
    %47 = arith.addf %42, %46 : vector<40x16xf32>
    %c0_21 = arith.constant 0 : index
    %c0_22 = arith.constant 0 : index
    %48 = vector.load %arg10[%c0_21, %c0_22] : memref<40x16xf32, #tpu.memory_space<vmem>>, vector<40x16xf32>
    tpu.vector_store %arg10[%c0_21, %c0_22], %47 {strides = array<i32>} : memref<40x16xf32, #tpu.memory_space<vmem>>, vector<40x16xf32>,
    %c7_i32 = arith.constant 7 : i32
    %49 = arith.cmpi eq, %arg0, %c7_i32 : i32
    %50 = arith.extui %49 : i1 to i32
    %c0_i32_23 = arith.constant 0 : i32
    %51 = arith.cmpi ne, %50, %c0_i32_23 : i32
    scf.if %51 {
      %c0_24 = arith.constant 0 : index
      %c0_25 = arith.constant 0 : index
      %52 = vector.load %arg9[%c0_24, %c0_25] : memref<40x16xf32, #tpu.memory_space<vmem>>, vector<40x16xf32>
      tpu.vector_store %arg9[%c0_24, %c0_25], %47 {strides = array<i32>} : memref<40x16xf32, #tpu.memory_space<vmem>>, vector<40x16xf32>,
      %c0_26 = arith.constant 0 : index
      %c0_27 = arith.constant 0 : index
      %53 = vector.load %arg3[%c0_26, %c0_27] : memref<8x16xf32, #tpu.memory_space<vmem>>, vector<8x16xf32>
      %c0_28 = arith.constant 0 : index
      %c0_29 = arith.constant 0 : index
      %54 = vector.load %arg9[%c0_28, %c0_29] : memref<40x16xf32, #tpu.memory_space<vmem>>, vector<8x16xf32>
      tpu.vector_store %arg9[%c0_28, %c0_29], %53 {strides = array<i32>} : memref<40x16xf32, #tpu.memory_space<vmem>>, vector<8x16xf32>,
    } else {
    }
    return
  }
  func.func @transform_0(%arg0: i32) -> (i32, i32) {
    %c0_i32 = arith.constant 0 : i32
    %c0_i32_0 = arith.constant 0 : i32
    %c0_i32_1 = arith.constant 0 : i32
    return %c0_i32, %c0_i32_0 : i32, i32
  }
  func.func @transform_1(%arg0: i32) -> (i32, i32) {
    %c0_i32 = arith.constant 0 : i32
    %c0_i32_0 = arith.constant 0 : i32
    %c0_i32_1 = arith.constant 0 : i32
    return %c0_i32, %c0_i32_0 : i32, i32
  }
  func.func @transform_2(%arg0: i32) -> (i32, i32) {
    %c0_i32 = arith.constant 0 : i32
    %c0_i32_0 = arith.constant 0 : i32
    %c0_i32_1 = arith.constant 0 : i32
    return %c0_i32, %c0_i32_0 : i32, i32
  }
  func.func @transform_3(%arg0: i32) -> (i32, i32) {
    %c0_i32 = arith.constant 0 : i32
    %c0_i32_0 = arith.constant 0 : i32
    %c0_i32_1 = arith.constant 0 : i32
    return %c0_i32, %c0_i32_0 : i32, i32
  }
  func.func @transform_4(%arg0: i32) -> (i32, i32) {
    %c0_i32 = arith.constant 0 : i32
    %c0_i32_0 = arith.constant 0 : i32
    %c0_i32_1 = arith.constant 0 : i32
    return %c0_i32, %c0_i32_0 : i32, i32
  }
  func.func @transform_5(%arg0: i32) -> (i32, i32) {
    %c0_i32 = arith.constant 0 : i32
    %c0_i32_0 = arith.constant 0 : i32
    %c0_i32_1 = arith.constant 0 : i32
    return %c0_i32, %c0_i32_0 : i32, i32
  }
  func.func @transform_6(%arg0: i32) -> (i32, i32) {
    %c0_i32 = arith.constant 0 : i32
    %c0_i32_0 = arith.constant 0 : i32
    %c0_i32_1 = arith.constant 0 : i32
    return %c0_i32, %c0_i32_0 : i32, i32
  }
  func.func @transform_7(%arg0: i32) -> (i32, i32, i32) {
    %c0_i32 = arith.constant 0 : i32
    %c0_i32_0 = arith.constant 0 : i32
    %c0_i32_1 = arith.constant 0 : i32
    return %arg0, %c0_i32, %c0_i32_0 : i32, i32, i32
  }
  func.func @transform_8(%arg0: i32) -> (i32, i32) {
    %c0_i32 = arith.constant 0 : i32
    %c0_i32_0 = arith.constant 0 : i32
    %c0_i32_1 = arith.constant 0 : i32
    return %c0_i32, %c0_i32_0 : i32, i32
  }
}

</mosaic_0001>

<bundles_post_ra>
// kernel: _sample_impl.1
= control target key start
LH: loop header
LB: loop body
LE: loop exit
PB: predicated region body
PF: predicated region fallthrough
CT: control target
= control target key end

     0   :  { %13 = vsyncpa [#allocation4], 0  ;;  %s933_s27 = smov 0   ;;  %s1177_s0 = inlined_call_operand.vmem [shape: f32[8,8], index: 0, kind: input, shape index: {}]   ;;  %s1178_s1 = inlined_call_operand.vmem [shape: f32[40,16], index: 1, kind: input, shape index: {}]   ;;  %s1179_s2 = inlined_call_operand.vmem [shape: f32[8,16], index: 2, kind: input, shape index: {}]   ;;  %s1180_s3 = inlined_call_operand.vmem [shape: f32[16,128], index: 3, kind: input, shape index: {}]   ;;  %s1181_s4 = inlined_call_operand.vmem [shape: f32[8,128], index: 4, kind: input, shape index: {}]   ;;  %s1182_s5 = inlined_call_operand.vmem [shape: f32[128,16], index: 5, kind: input, shape index: {}]   ;;  %s1183_s6 = inlined_call_operand.vmem [shape: f32[1,16], index: 6, kind: input, shape index: {}]   ;;  %s1184_s7 = inlined_call_operand.vmem [shape: f32[8,40,16], index: 7, kind: input, shape index: {}]   ;;  %s1185_s8 = inlined_call_operand.vmem [shape: f32[40,16], index: 8, kind: output, shape index: {}]  }
   0x1 LB: > { %s939_s28 = sadd.s32 4294967295, %s883_s27   ;;  %p687_p0 = scmp.ge.s32.totalorder %s883_s27, 1  ;;  %s883_s27 = sphi %s933_s27, %s19_s27  }
   0x2   : > { %p218_p1 = scmp.lt.s32.totalorder %s883_s27, 9  ;;  %s231_s9 = sshll.u32 %s1177_s0, 4  ;;  %s232_s9 = int_to_ptr.vmem [resolvable:$true] %s231_s9 }
   0x3   : > { %p845_p4 = scmp.eq.s32.totalorder %s939_s28, 0  ;;  %s858_s11 = scalar_lea.vmem %s232_s9, 128 }
   0x4   : > { %p947_p3 = pnand %p687_p0, %p218_p1  ;;  %p859_p7 = scmp.ne.s32.totalorder %s232_s9, %s858_s11 }
   0x5   : > { %p866_p11 = scmp.lt.s32.totalorder %s232_s9, %s232_s9  ;;  %p867_p12 = scmp.lt.s32.totalorder %s858_s11, %s858_s11 }
   0x6   : > { %p841_p5 = pneg %p947_p3 }
   0x7   : > { %p868_p13 = por %p867_p12, %p866_p11 }
   0x8   : > { %p842_p6 = pnand %p845_p4, %p841_p5 }
   0xa   : > { %p860_p8 = pneg %p842_p6 }
   0xc   : > { %p861_p9 = pnand %p860_p8, %p859_p7 }
   0xe   : > { %p862_p10 = pneg %p861_p9 }
  0x10   : > { %p869_p2 = pnand %p868_p13, %p862_p10 }
  0x12   : > { %872 = shalt.err (!%p869_p2)
}
  0x13   : > { %s885_s12 = smov [#allocation3]   ;;  %270 = sbr.rel (%p947_p3) target bundleno = 474 (0x1da), region = 52 }
  0x14   : > { %844 = dma.vmem_to_smem (!%p842_p6), %s232_s9, 128, %s885_s12, [#allocation4]  }
  0x18   : > { %878 = dma.done.wait (%p845_p4), [#allocation4], 128  }
  0x19   : > { %880 = vsyncadd (%p845_p4), [#allocation4], 4294967168 }
  0x1a   : > { %276 = sfence }
  0x1b   : > { %p300_p0 = scmp.lt.s32.totalorder %s939_s28, 7  ;;  %p1187_p1 = scmp.ne.s32.totalorder %s939_s28, 0 }
  0x1d   : > { %s301_s13 = scalar_select %p300_p0, %s939_s28, 7 }
  0x1e   : > { %308 = sbr.rel (%p1187_p1) target bundleno = 39 (0x27), region = 60 }
  0x1f   : > { %s836_s14 = smul.u32 40, %s301_s13 }
  0x21   : > { %s967_s17 = scalar_lea.vmem %s1184_s7, %s836_s14 }
  0x23   : > { %v309_v0 = vld [vmem:[%s1178_s1] sm:$0xff]  ;;  %vm314_vm0 = vcmask 130048   ;;  %v310_v1 = vld [vmem:[%s1178_s1 + $0x8] sm:$0xff]  ;;  %v311_v2 = vld [vmem:[%s1178_s1 + $0x10] sm:$0xff] }
  0x24   : > { %315 = vst.msk [vmem:[#allocation2] sm:$0xff] %vm314_vm0, %v309_v0  ;;  %316 = vst.msk [vmem:[#allocation2 + $0x8] sm:$0xff] %vm314_vm0, %v310_v1  ;;  %v312_v3 = vld [vmem:[%s1178_s1 + $0x18] sm:$0xff]  ;;  %v313_v4 = vld [vmem:[%s1178_s1 + $0x20] sm:$0xff] }
  0x25   : > { %317 = vst.msk [vmem:[#allocation2 + $0x10] sm:$0xff] %vm314_vm0, %v311_v2  ;;  %318 = vst.msk [vmem:[#allocation2 + $0x18] sm:$0xff] %vm314_vm0, %v312_v3 }
  0x26   : > { %319 = vst.msk [vmem:[#allocation2 + $0x20] sm:$0xff] %vm314_vm0, %v313_v4 }
  0x27 PF: > { %v331_v5 = vld [vmem:[%s1180_s3 + $0x8] sm:$0xff]  ;;  %v320_v6 = vld [vmem:[%s1179_s2] sm:$0xff]  ;;  %vm321_vm1 = vcmask 130048   ;;  %v886_v7 = vmov 0.0   ;;  %vm887_vm2 = vmmov 0   ;;  %v461_v9 = vld [vmem:[%s1182_s5 + $0x78] sm:$0xff]  ;;  %s328_s10 = scalar_lea.vmem %s1181_s4, %s939_s28 }
  0x28   : > { %738 = vmatprep.subr.mxu0 %v886_v7  ;;  %v330_v8 = vld [vmem:[%s1180_s3] sm:$0xff]  ;;  %742 = vmatprep.mubr.msk.f32.mxu0 %vm887_vm2, %v886_v7  ;;  %322 = vst.msk [vmem:[#allocation2] sm:$0xff] %vm321_vm1, %v320_v6  ;;  %v460_v10 = vld [vmem:[%s1182_s5 + $0x70] sm:$0xff]  ;;  %v459_v11 = vld [vmem:[%s1182_s5 + $0x68] sm:$0xff]  ;;  %s701_s11 = sshll.u32 %s939_s28, 7  ;;  %p707_p2 = scmp.ne.s32.totalorder %s939_s28, 7 }
  0x29   : > { %739 = vmatpush3.msra.mxu0 %v331_v5  ;;  %804 = vmatprep.subr.mxu1 %v886_v7  ;;  %v458_v13 = vld [vmem:[%s1182_s5 + $0x60] sm:$0xff]  ;;  %v457_v15 = vld [vmem:[%s1182_s5 + $0x58] sm:$0xff]  ;;  %v456_v17 = vld [vmem:[%s1182_s5 + $0x50] sm:$0xff]  ;;  %s560_s12 = sld [smem:[#allocation3 + %s701_s11]]  ;;  %s561_s13 = sadd.s32 1, %s701_s11 }
  0x2a   : > { %740 = vmatprep.subr.mxu0 %v886_v7  ;;  %820 = vmatpush3.msra.mxu1 %v461_v9  ;;  %v455_v19 = vld [vmem:[%s1182_s5 + $0x48] sm:$0xff]  ;;  %v454_v21 = vld [vmem:[%s1182_s5 + $0x40] sm:$0xff]  ;;  %v453_v22 = vld [vmem:[%s1182_s5 + $0x38] sm:$0xff]  ;;  %s565_s14 = sadd.s32 3, %s701_s11  ;;  %s562_s15 = sld [smem:[#allocation3 + %s561_s13]] }
  0x2b   : > { %741 = vmatpush3.msra.mxu0 %v330_v8  ;;  %805 = vmatprep.subr.mxu1 %v886_v7  ;;  %v1025_v14 = vld [vmem:[#allocation2 + $0x8] sm:$0xff]  ;;  %v452_v23 = vld [vmem:[%s1182_s5 + $0x30] sm:$0xff]  ;;  %v450_v25 = vld [vmem:[%s1182_s5 + $0x20] sm:$0xff]  ;;  %s563_s16 = sadd.s32 2, %s701_s11  ;;  %s567_s18 = sadd.s32 4, %s701_s11 }
  0x2c   : > { %757 = vmatprep.subr.mxu0 %v886_v7  ;;  %821 = vmatpush3.msra.mxu1 %v460_v10  ;;  %v1037_v16 = vld [vmem:[#allocation2 + $0x10] sm:$0xff]  ;;  %v1049_v18 = vld [vmem:[#allocation2 + $0x18] sm:$0xff]  ;;  %v451_v24 = vld [vmem:[%s1182_s5 + $0x28] sm:$0xff]  ;;  %s566_s19 = sld [smem:[#allocation3 + %s565_s14]] }
  0x2d   : > { %806 = vmatprep.subr.mxu1 %v886_v7  ;;  %795 = vmatprep.mubr.msk.f32.mxu1 %vm887_vm2, %v886_v7  ;;  %v1061_v20 = vld [vmem:[#allocation2 + $0x20] sm:$0xff]  ;;  %v449_v26 = vld [vmem:[%s1182_s5 + $0x18] sm:$0xff]  ;;  %v448_v27 = vld [vmem:[%s1182_s5 + $0x10] sm:$0xff]  ;;  %s564_s22 = sld [smem:[#allocation3 + %s563_s16]] }
  0x2e   : > { %822 = vmatpush3.msra.mxu1 %v459_v11  ;;  %v447_v28 = vld [vmem:[%s1182_s5 + $0x8] sm:$0xff]  ;;  %v446_v29 = vld [vmem:[%s1182_s5] sm:$0xff]  ;;  %s568_s23 = sld [smem:[#allocation3 + %s567_s18]] }
  0x2f   : > { %v1015_v12 = vld [vmem:[#allocation2] sm:$0xff]  ;;  %807 = vmatprep.subr.mxu1 %v886_v7  ;;  %v569_v53 = vstv %s560_s12 }
  0x30   : > { %743 = vmatmul.mubr.msk.f32.vlgmr.msra.gmra.mxu0 %vm321_vm1, %v1015_v12  ;;  %823 = vmatpush3.msra.mxu1 %v458_v13  ;;  %v694_v30 = vld [vmem:[%s328_s10] ss:$0 sm:$0xff]  ;;  %v580_v57 = vstv %s562_s15 }
  0x31   : > { %745 = vmatprep.mubr.msk.f32.mxu0 %vm887_vm2, %v886_v7  ;;  %758 = vmatpush3.msra.mxu0 %v461_v9  ;;  %v700_v51 = vld [vmem:[%s1183_s6] ss:$0 sm:$0xff] }
  0x32   : > { %808 = vmatprep.subr.mxu1 %v886_v7  ;;  %759 = vmatprep.subr.mxu0 %v886_v7  ;;  %v602_v61 = vstv %s566_s19  ;;  %v613_v2 = vld [vmem:[%s967_s17] sm:$0xff] }
  0x33   : > { %824 = vmatpush3.msra.mxu1 %v457_v15  ;;  %760 = vmatpush3.msra.mxu0 %v460_v10  ;;  %v596_v1 = vstv %s564_s22  ;;  %v603_v5 = vmul.f32 %v602_v61, %v1015_v12 }
  0x34   : > { %746 = vmatmul.mubr.msk.f32.gmra.mxu0 %vm321_vm1, %v1025_v14  ;;  %809 = vmatprep.subr.mxu1 %v886_v7  ;;  %v618_v3 = vstv %s568_s23 }
  0x35   : > { %748 = vmatprep.mubr.msk.f32.mxu0 %vm887_vm2, %v886_v7  ;;  %761 = vmatprep.subr.mxu0 %v886_v7 }
  0x36   : > { %825 = vmatpush3.msra.mxu1 %v456_v17  ;;  %762 = vmatpush3.msra.mxu0 %v459_v11  ;;  %v619_v11 = vmul.f32 %v618_v3, %v613_v2 }
  0x37   : > { %810 = vmatprep.subr.mxu1 %v886_v7  ;;  %763 = vmatprep.subr.mxu0 %v886_v7 }
  0x38   : > { %749 = vmatmul.mubr.msk.f32.gmra.mxu0 %vm321_vm1, %v1037_v16  ;;  %826 = vmatpush3.msra.mxu1 %v455_v19 }
  0x39   : > { %751 = vmatprep.mubr.msk.f32.mxu0 %vm887_vm2, %v886_v7  ;;  %764 = vmatpush3.msra.mxu0 %v458_v13 }
  0x3a   : > { %765 = vmatprep.subr.mxu0 %v886_v7  ;;  %811 = vmatprep.subr.mxu1 %v886_v7 }
  0x3b   : > { %766 = vmatpush3.msra.mxu0 %v457_v15  ;;  %827 = vmatpush3.msra.mxu1 %v454_v21  ;;  %v614_v15 = vld [vmem:[%s967_s17 + $0x8] sm:$0xff] }
  0x3c   : > { %752 = vmatmul.mubr.msk.f32.gmra.mxu0 %vm321_vm1, %v1049_v18  ;;  %767 = vmatprep.subr.mxu0 %v886_v7 }
  0x3d   : > { %754 = vmatprep.mubr.msk.f32.mxu0 %vm887_vm2, %v886_v7  ;;  %768 = vmatpush3.msra.mxu0 %v456_v17 }
  0x3e   : > { %769 = vmatprep.subr.mxu0 %v886_v7  ;;  %812 = vmatprep.subr.mxu1 %v886_v7 }
  0x3f   : > { %770 = vmatpush3.msra.mxu0 %v455_v19  ;;  %828 = vmatpush3.msra.mxu1 %v453_v22  ;;  %v604_v19 = vmul.f32 %v602_v61, %v1025_v14 }
  0x40   : > { %755 = vmatmul.mubr.msk.f32.gmra.mxu0 %vm321_vm1, %v1061_v20  ;;  %771 = vmatprep.subr.mxu0 %v886_v7 }
  0x41   : > { %772 = vmatpush3.msra.mxu0 %v454_v21  ;;  %813 = vmatprep.subr.mxu1 %v886_v7 }
  0x42   : > { %773 = vmatprep.subr.mxu0 %v886_v7  ;;  %829 = vmatpush3.msra.mxu1 %v452_v23 }
  0x43   : > { %774 = vmatpush3.msra.mxu0 %v453_v22  ;;  %814 = vmatprep.subr.mxu1 %v886_v7 }
  0x44   : > { %775 = vmatprep.subr.mxu0 %v886_v7  ;;  %830 = vmatpush3.msra.mxu1 %v451_v24 }
  0x45   : > { %776 = vmatpush3.msra.mxu0 %v452_v23  ;;  %815 = vmatprep.subr.mxu1 %v886_v7 }
  0x46   : > { %777 = vmatprep.subr.mxu0 %v886_v7  ;;  %831 = vmatpush3.msra.mxu1 %v450_v25 }
  0x47   : > { %778 = vmatpush3.msra.mxu0 %v451_v24  ;;  %789 = vmatprep.mubr.msk.f32.mxu0 %vm887_vm2, %v886_v7 }
  0x48   : > { %779 = vmatprep.subr.mxu0 %v886_v7  ;;  %816 = vmatprep.subr.mxu1 %v886_v7 }
  0x49   : > { %780 = vmatpush3.msra.mxu0 %v450_v25  ;;  %832 = vmatpush3.msra.mxu1 %v449_v26 }
  0x4a   : > { %781 = vmatprep.subr.mxu0 %v886_v7  ;;  %817 = vmatprep.subr.mxu1 %v886_v7 }
  0x4b   : > { %782 = vmatpush3.msra.mxu0 %v449_v26  ;;  %833 = vmatpush3.msra.mxu1 %v448_v27 }
  0x4c   : > { %783 = vmatprep.subr.mxu0 %v886_v7  ;;  %818 = vmatprep.subr.mxu1 %v886_v7 }
  0x4d   : > { %784 = vmatpush3.msra.mxu0 %v448_v27  ;;  %834 = vmatpush3.msra.mxu1 %v447_v28 }
  0x4e   : > { %785 = vmatprep.subr.mxu0 %v886_v7  ;;  %819 = vmatprep.subr.mxu1 %v886_v7 }
  0x4f   : > { %786 = vmatpush3.msra.mxu0 %v447_v28  ;;  %835 = vmatpush3.msra.mxu1 %v446_v29 }
  0x50   : > { %787 = vmatprep.subr.mxu0 %v886_v7 }
  0x51   : > { %788 = vmatpush3.msra.mxu0 %v446_v29 }
  0xf0   : > { %v417_v31 = vpop.f32.mrf.mxu0 }
  0xf1   : > { %v418_v32 = vadd.f32 %v694_v30, %v417_v31 }
  0xf2   : > { %v744_v33 = vpop.f32.mrf.mxu0 }
  0xf3   : > { %v441_v34 = vmax.f32 %v418_v32, 0.0  ;;  %v605_v32 = vmul.f32 %v602_v61, %v1037_v16 }
  0xf4   : > { %v422_v35 = vpop.f32.mrf.mxu0 }
  0xf5   : > { %v423_v36 = vadd.f32 %v694_v30, %v422_v35  ;;  %790 = vmatmul.mubr.f32.vlgmr.msra.gmra.mxu0 %v441_v34 }
  0xf6   : > { %v747_v37 = vpop.f32.mrf.mxu0  ;;  %792 = vmatprep.mubr.msk.f32.mxu0 %vm887_vm2, %v886_v7 }
  0xf7   : > { %v442_v38 = vmax.f32 %v423_v36, 0.0 }
  0xf8   : > { %v427_v39 = vpop.f32.mrf.mxu0 }
  0xf9   : > { %v428_v40 = vadd.f32 %v694_v30, %v427_v39  ;;  %793 = vmatmul.mubr.f32.gmra.mxu0 %v442_v38 }
  0xfa   : > { %v750_v41 = vpop.f32.mrf.mxu0 }
  0xfb   : > { %v443_v42 = vmax.f32 %v428_v40, 0.0 }
  0xfc   : > { %v432_v43 = vpop.f32.mrf.mxu0 }
  0xfd   : > { %v433_v44 = vadd.f32 %v694_v30, %v432_v43  ;;  %796 = vmatmul.mubr.f32.vlgmr.msra.gmra.mxu1 %v443_v42  ;;  %v616_v43 = vld [vmem:[%s967_s17 + $0x18] sm:$0xff] }
  0xfe   : > { %v753_v45 = vpop.f32.mrf.mxu0  ;;  %798 = vmatprep.mubr.msk.f32.mxu1 %vm887_vm2, %v886_v7 }
  0xff   : > { %v444_v46 = vmax.f32 %v433_v44, 0.0  ;;  %v606_v44 = vmul.f32 %v602_v61, %v1049_v18 }
 0x100   : > { %v437_v47 = vpop.f32.mrf.mxu0 }
 0x101   : > { %v438_v48 = vadd.f32 %v694_v30, %v437_v47  ;;  %799 = vmatmul.mubr.f32.gmra.mxu1 %v444_v46  ;;  %v615_v30 = vld [vmem:[%s967_s17 + $0x10] sm:$0xff] }
 0x102   : > { %v756_v49 = vpop.f32.mrf.mxu0  ;;  %801 = vmatprep.mubr.msk.f32.mxu1 %vm887_vm2, %v886_v7  ;;  %v621_v37 = vmul.f32 %v618_v3, %v615_v30 }
 0x103   : > { %v445_v50 = vmax.f32 %v438_v48, 0.0  ;;  %v622_v49 = vmul.f32 %v618_v3, %v616_v43 }
 0x105   : > { %802 = vmatmul.mubr.f32.gmra.mxu1 %v445_v50 }
 0x1b5   : > { %v535_v52 = vpop.f32.mrf.mxu0 }
 0x1b6   : > { %v536_v54 = vadd.f32 %v700_v51, %v535_v52  ;;  %v607_v52 = vmul.f32 %v602_v61, %v1061_v20 }
 0x1b7   : > { %v791_v55 = vpop.f32.mrf.mxu0 }
 0x1b8   : > { %v570_v56 = vmul.f32 %v569_v53, %v536_v54 }
 0x1b9   : > { %v540_v58 = vpop.f32.mrf.mxu0 }
 0x1ba   : > { %v575_v59 = vsub.f32 %v1015_v12, %v570_v56  ;;  %v541_v60 = vadd.f32 %v700_v51, %v540_v58  ;;  %v620_v12 = vmul.f32 %v618_v3, %v614_v15 }
 0x1bb   : > { %v794_v62 = vpop.f32.mrf.mxu0 }
 0x1bc   : > { %v581_v63 = vmul.f32 %v580_v57, %v575_v59  ;;  %v571_v0 = vmul.f32 %v569_v53, %v541_v60 }
 0x1bd   : > { %v545_v4 = vpop.f32.mrf.mxu1 }
 0x1be   : > { %v702_v6 = vclamps-f32 %v581_v63, 1.0  ;;  %v576_v7 = vsub.f32 %v1025_v14, %v571_v0  ;;  %v546_v8 = vadd.f32 %v700_v51, %v545_v4 }
 0x1bf   : > { %v797_v9 = vpop.f32.mrf.mxu1 }
 0x1c0   : > { %v597_v10 = vmul.f32 %v702_v6, %v596_v1  ;;  %v582_v13 = vmul.f32 %v580_v57, %v576_v7  ;;  %v572_v17 = vmul.f32 %v569_v53, %v546_v8 }
 0x1c1   : > { %v550_v21 = vpop.f32.mrf.mxu1 }
 0x1c2   : > { %v608_v22 = vadd.f32 %v603_v5, %v597_v10  ;;  %v703_v23 = vclamps-f32 %v582_v13, 1.0  ;;  %v577_v24 = vsub.f32 %v1037_v16, %v572_v17  ;;  %v551_v25 = vadd.f32 %v700_v51, %v550_v21 }
 0x1c3   : > { %v800_v26 = vpop.f32.mrf.mxu1 }
 0x1c4   : > { %v624_v27 = vadd.f32 %v619_v11, %v608_v22  ;;  %v598_v28 = vmul.f32 %v703_v23, %v596_v1  ;;  %v583_v29 = vmul.f32 %v580_v57, %v577_v24  ;;  %v573_v31 = vmul.f32 %v569_v53, %v551_v25 }
 0x1c5   : > { %v555_v33 = vpop.f32.mrf.mxu1 }
 0x1c6   : > { %629 = vst.msk [vmem:[#allocation2] sm:$0xff] %vm321_vm1, %v624_v27  ;;  %v609_v14 = vadd.f32 %v604_v19, %v598_v28  ;;  %v704_v34 = vclamps-f32 %v583_v29, 1.0  ;;  %v578_v35 = vsub.f32 %v1049_v18, %v573_v31  ;;  %v556_v36 = vadd.f32 %v700_v51, %v555_v33  ;;  %v617_v51 = vld [vmem:[%s967_s17 + $0x20] sm:$0xff] }
 0x1c7   : > { %v803_v38 = vpop.f32.mrf.mxu1  ;;  %v623_v18 = vmul.f32 %v618_v3, %v617_v51 }
 0x1c8   : > { %v625_v39 = vadd.f32 %v620_v12, %v609_v14  ;;  %v599_v40 = vmul.f32 %v704_v34, %v596_v1  ;;  %v584_v41 = vmul.f32 %v580_v57, %v578_v35  ;;  %v574_v42 = vmul.f32 %v569_v53, %v556_v36 }
 0x1ca   : > { %630 = vst.msk [vmem:[#allocation2 + $0x8] sm:$0xff] %vm321_vm1, %v625_v39  ;;  %v610_v16 = vadd.f32 %v605_v32, %v599_v40  ;;  %v705_v45 = vclamps-f32 %v584_v41, 1.0  ;;  %v579_v46 = vsub.f32 %v1061_v20, %v574_v42 }
 0x1cc   : > { %v626_v47 = vadd.f32 %v621_v37, %v610_v16  ;;  %v600_v48 = vmul.f32 %v705_v45, %v596_v1  ;;  %v585_v50 = vmul.f32 %v580_v57, %v579_v46 }
 0x1ce   : > { %631 = vst.msk [vmem:[#allocation2 + $0x10] sm:$0xff] %vm321_vm1, %v626_v47  ;;  %v611_v54 = vadd.f32 %v606_v44, %v600_v48  ;;  %v706_v53 = vclamps-f32 %v585_v50, 1.0 }
 0x1d0   : > { %v627_v55 = vadd.f32 %v622_v49, %v611_v54  ;;  %v601_v56 = vmul.f32 %v706_v53, %v596_v1 }
 0x1d2   : > { %632 = vst.msk [vmem:[#allocation2 + $0x18] sm:$0xff] %vm321_vm1, %v627_v55  ;;  %v612_v58 = vadd.f32 %v607_v52, %v601_v56  ;;  %637 = sbr.rel (%p707_p2) target bundleno = 474 (0x1da), region = 64 }
 0x1d4   : > { %v628_v59 = vadd.f32 %v623_v18, %v612_v58 }
 0x1d6   : > { %633 = vst.msk [vmem:[#allocation2 + $0x20] sm:$0xff] %vm321_vm1, %v628_v59 }
 0x1d7   : > { %638 = vst.msk [vmem:[%s1185_s8] sm:$0xff] %vm321_vm1, %v624_v27  ;;  %639 = vst.msk [vmem:[%s1185_s8 + $0x8] sm:$0xff] %vm321_vm1, %v625_v39  ;;  %v643_v20 = vld [vmem:[%s1179_s2] sm:$0xff] }
 0x1d8   : > { %640 = vst.msk [vmem:[%s1185_s8 + $0x10] sm:$0xff] %vm321_vm1, %v626_v47  ;;  %641 = vst.msk [vmem:[%s1185_s8 + $0x18] sm:$0xff] %vm321_vm1, %v627_v55 }
 0x1d9   : > { %642 = vst.msk [vmem:[%s1185_s8 + $0x20] sm:$0xff] %vm321_vm1, %v628_v59  ;;  %644 = vst.msk [vmem:[%s1185_s8] sm:$0xff] %vm321_vm1, %v643_v20 }
 0x1da PF: > { %s19_s27 = sadd.s32 1, %s883_s27  }
 0x1db   : > { %p16_p3 = scmp.ge.s32.totalorder %s19_s27, 10  }
 0x1dd   :  { %18 = sbr.rel (!%p16_p3) target bundleno = 1 (0x1), region = 92 }
 0x1e2   :  { %656 = vsyncpa [#allocation4], 1 }
 0x1e3   :  { %658 = vsyncpa [#allocation4 + $0x1], 1 }

</bundles_post_ra>
